<compile_context>
chip_gen: v7x
topology: tpu7x:2x2x1
jax: 0.10.0
libtpu: 0.0.40
codegen_flags: <defaults>
</compile_context>

<pallas_src>
import jax
import jax.numpy as jnp
from jax.experimental import pallas as pl
from jax.experimental.pallas import tpu as pltpu


# ---------------------------------------------------------------------------
# Kernel bodies (each operates on one (H, lane_tile) block).
# ---------------------------------------------------------------------------

def _make_vpu_kernel(kernels, H):
    """Roll-and-accumulate conv for small H (MXU not worth feeding)."""
    offsets = []
    off = 0
    for k in kernels:
        offsets.append(off)
        off += k

    def kernel(x_ref, taps_ref, bias_ref, alpha_ref, o_ref):
        y = x_ref[...].astype(jnp.float32)                      # (H, lanes)
        h_col = jax.lax.broadcasted_iota(jnp.int32, (H, 1), 0)  # column only
        for l, k in enumerate(kernels):
            pad = k // 2
            base = offsets[l]
            acc = None
            for i in range(k):
                s = i - pad                     # row shift for this tap
                tap = taps_ref[base + i]        # SMEM scalar read
                if s == 0:
                    term = y * tap
                else:
                    rolled = pltpu.roll(y, shift=(-s) % H, axis=0)
                    if s > 0:
                        valid = h_col < (H - s)
                    else:
                        valid = h_col >= (-s)
                    # Fold the zero-padding boundary mask into the tap
                    # coefficient: one (H, 1) column broadcast per tap, no
                    # full-block select.
                    coef = jnp.where(valid, tap, 0.0)
                    term = rolled * coef
                acc = term if acc is None else acc + term
            acc = acc + bias_ref[l]
            y = jnp.where(acc > 0, acc, alpha_ref[l] * acc)     # PReLU
        o_ref[...] = y.astype(o_ref.dtype)

    return kernel


def _make_mxu_kernel(num_layers):
    """Banded-matmul conv: (H, H) @ (H, lanes) per layer on the MXU."""

    def kernel(x_ref, band_ref, bias_ref, alpha_ref, o_ref):
        y = x_ref[...].astype(jnp.float32)                      # (H, lanes)
        for l in range(num_layers):
            acc = jnp.dot(band_ref[l], y, preferred_element_type=jnp.float32)
            acc = acc + bias_ref[l]
            y = jnp.where(acc > 0, acc, alpha_ref[l] * acc)     # PReLU
        o_ref[...] = y.astype(o_ref.dtype)

    return kernel


def _band_matrices(kernels, taps_flat, H):
    """T_l[h, h2] = tap_l[h2 - h + pad] inside the band, 0 outside -> (L,H,H)."""
    rows = jnp.arange(H)[:, None]
    cols = jnp.arange(H)[None, :]
    mats = []
    off = 0
    for k in kernels:
        pad = k // 2
        idx = cols - rows + pad
        valid = (idx >= 0) & (idx < k)
        taps = taps_flat[off:off + k].astype(jnp.float32)
        mats.append(jnp.where(valid, taps[jnp.clip(idx, 0, k - 1)], 0.0))
        off += k
    return jnp.stack(mats)


# ---------------------------------------------------------------------------
# Wrapper.
# ---------------------------------------------------------------------------

def _plan_lanes(H, width, n_outer_blocks):
    """Lane tile (multiple of 128) targeting ~2 MiB blocks, plus padded width."""
    bytes_per_col = H * 4
    target_bytes = 2 << 20
    max_bytes = 4 << 20
    lanes = max(128, (target_bytes // bytes_per_col) // 128 * 128)
    lanes = min(lanes, max(128, (max_bytes // bytes_per_col) // 128 * 128))
    w128 = -(-width // 128) * 128
    lanes = min(lanes, w128)
    # Prefer >= 2 total grid blocks when affordable (v7x has 2 TensorCores).
    if n_outer_blocks * (-(-w128 // lanes)) < 2 and lanes >= 256:
        lanes = max(128, (lanes // 2) // 128 * 128)
    padded_w = -(-width // lanes) * lanes
    return lanes, padded_w


def cnn_conv_layers_pre(x, params):
    """Forward pass matching CNNConvLayersPre.  x: (N, 1, H, W) float32."""
    kernels, taps_flat, biases, alphas = params
    kernels = tuple(int(k) for k in kernels)
    N, C, H, W = x.shape
    assert C == 1, "module is defined for in_channels == 1"
    for k in kernels:
        # TODO(synk): even kernel sizes change H (H -> H + 1 in PyTorch); only
        # the usual shape-preserving odd sizes are supported here.
        assert k % 2 == 1, "only odd kernel sizes supported"
    L = len(kernels)

    taps_flat = taps_flat.astype(jnp.float32)
    biases = biases.astype(jnp.float32)
    alphas = alphas.astype(jnp.float32)

    # MXU (banded-matmul) path when H is big enough to feed the MXU and the
    # (L, H, H) band matrices comfortably fit in VMEM.
    # TODO(synk): very tall H would need an H-tiled banded matmul (halo rows);
    # such cases fall back to the roll-based VPU path.
    use_mxu = H >= 64 and L * H * H * 4 <= (8 << 20)

    if use_mxu:
        weights = _band_matrices(kernels, taps_flat, H)          # (L, H, H)
        kernel = _make_mxu_kernel(L)
    else:
        weights = taps_flat                                      # (sum(k),)
        kernel = _make_vpu_kernel(kernels, H)

    xs = x[:, 0]   # (N, H, W): drops the unit channel dim, no data movement.

    if W >= 128:
        # Direct layout: H already on sublanes, W on lanes -> no transpose.
        lanes, Wp = _plan_lanes(H, W, N)
        if Wp != W:
            xs = jnp.pad(xs, ((0, 0), (0, 0), (0, Wp - W)))
        grid = (N, Wp // lanes)
        x_spec = pl.BlockSpec((None, H, lanes), lambda n, j: (n, 0, j))
        o_spec = pl.BlockSpec((None, H, lanes), lambda n, j: (n, 0, j))
        if use_mxu:
            w_spec = pl.BlockSpec((L, H, H), lambda n, j: (0, 0, 0))
        else:
            w_spec = pl.BlockSpec(memory_space=pltpu.MemorySpace.SMEM)
        out_shape = jax.ShapeDtypeStruct((N, H, Wp), x.dtype)
        semantics = ("parallel", "parallel")
    else:
        # Lane-sparse fallback (tiny W): flatten batch onto the lane axis so
        # stores are lane-dense; the transpose is negligible at these sizes.
        flat = jnp.transpose(xs, (1, 0, 2)).reshape(H, N * W)
        lanes, Wp = _plan_lanes(H, N * W, 1)
        if Wp != N * W:
            flat = jnp.pad(flat, ((0, 0), (0, Wp - N * W)))
        xs = flat
        grid = (Wp // lanes,)
        x_spec = pl.BlockSpec((H, lanes), lambda j: (0, j))
        o_spec = pl.BlockSpec((H, lanes), lambda j: (0, j))
        if use_mxu:
            w_spec = pl.BlockSpec((L, H, H), lambda j: (0, 0, 0))
        else:
            w_spec = pl.BlockSpec(memory_space=pltpu.MemorySpace.SMEM)
        out_shape = jax.ShapeDtypeStruct((H, Wp), x.dtype)
        semantics = ("parallel",)

    block_bytes = H * lanes * 4
    weight_bytes = int(weights.size) * 4 if use_mxu else 0
    # Double-buffered in+out blocks + weights + headroom, capped for 64 MiB
    # (v7x) parts.
    vmem_limit = min(40 << 20,
                     max(16 << 20, 6 * block_bytes + 2 * weight_bytes + (2 << 20)))

    out = pl.pallas_call(
        kernel,
        out_shape=out_shape,
        grid=grid,
        in_specs=[
            x_spec,
            w_spec,
            pl.BlockSpec(memory_space=pltpu.MemorySpace.SMEM),  # biases
            pl.BlockSpec(memory_space=pltpu.MemorySpace.SMEM),  # PReLU alphas
        ],
        out_specs=o_spec,
        compiler_params=pltpu.CompilerParams(
            dimension_semantics=semantics,
            vmem_limit_bytes=int(vmem_limit),
        ),
    )(xs, weights, biases, alphas)

    if W >= 128:
        return out[:, :, :W].reshape(N, 1, H, W)
    out = out[:, :N * W].reshape(H, N, W)
    return jnp.transpose(out, (1, 0, 2)).reshape(N, 1, H, W)


# ---------------------------------------------------------------------------
# Parameter init + pure-JAX reference (correctness check).
# ---------------------------------------------------------------------------

def init_params(key, kernels):
    """Deterministic parameter init mimicking nn.Conv2d / nn.PReLU defaults."""
    taps_list, biases, alphas = [], [], []
    for k in kernels:
        key, k1, k2 = jax.random.split(key, 3)
        bound = 1.0 / float(k) ** 0.5  # fan_in = in_channels * k * 1 = k
        taps_list.append(jax.random.uniform(k1, (k,), jnp.float32, -bound, bound))
        biases.append(jax.random.uniform(k2, (), jnp.float32, -bound, bound))
        alphas.append(jnp.float32(0.25))  # PReLU default
    return (
        tuple(kernels),
        jnp.concatenate(taps_list),
        jnp.stack(biases),
        jnp.stack(alphas),
    )


def _reference_forward(x, params):
    """Pure-JAX reference of the PyTorch module."""
    kernels, taps_flat, biases, alphas = params
    y = x
    off = 0
    for l, k in enumerate(kernels):
        pad = k // 2
        H = y.shape[2]
        xp = jnp.pad(y, ((0, 0), (0, 0), (pad, pad), (0, 0)))
        out = sum(taps_flat[off + i] * xp[:, :, i:i + H, :] for i in range(k))
        out = out + biases[l]
        y = jnp.where(out > 0, out, alphas[l] * out)
        off += k
    return y


if __name__ == "__main__":
    key = jax.random.PRNGKey(0)
    kernels = [3, 5, 3]
    kx, kx2, kp = jax.random.split(key, 3)
    params = init_params(kp, kernels)

    # Small input -> lane-flattened layout + VPU (roll) path.
    x_small = jax.random.normal(kx, (2, 1, 16, 16), jnp.float32)
    out_small = jax.block_until_ready(cnn_conv_layers_pre(x_small, params))
    ref_small = _reference_forward(x_small, params)
    assert out_small.shape == x_small.shape
    assert jnp.allclose(out_small, ref_small, atol=1e-5, rtol=1e-5)

    # Larger input -> direct (N, W-tile) layout + banded-matmul MXU path.
    x_big = jax.random.normal(kx2, (2, 1, 128, 256), jnp.float32)
    out_big = jax.block_until_ready(cnn_conv_layers_pre(x_big, params))
    ref_big = _reference_forward(x_big, params)
    assert out_big.shape == x_big.shape
    # f32 accumulation is used; tolerance leaves slack for the MXU's native
    # (multi-pass) f32 multiply path.
    assert jnp.allclose(out_big, ref_big, atol=2e-2, rtol=2e-2)

    print("KERNEL_OK")
</pallas_src>

<mosaic_0001>
module attributes {stable_mosaic.version = 11 : i64} {
  func.func @kernel(%arg0: i32, %arg1: memref<16x128xf32, #tpu.memory_space<vmem>>, %arg2: memref<11xf32, #tpu.memory_space<smem>>, %arg3: memref<3xf32, #tpu.memory_space<smem>>, %arg4: memref<3xf32, #tpu.memory_space<smem>>, %arg5: memref<16x128xf32, #tpu.memory_space<vmem>>) attributes {dimension_semantics = [#tpu.dimension_semantics<parallel>], iteration_bounds = array<i64: 1>, scalar_prefetch = 0 : i64, scratch_operands = 0 : i64, tpu.core_type = #tpu.core_type<tc>, window_params = [{transform_indices = @transform_0, window_bounds = array<i64: 16, 128>}, {transform_indices = @transform_1, window_bounds = array<i64: 11>}, {transform_indices = @transform_2, window_bounds = array<i64: 3>}, {transform_indices = @transform_3, window_bounds = array<i64: 3>}, {transform_indices = @transform_4, window_bounds = array<i64: 16, 128>}]} {
    %c0 = arith.constant 0 : index
    %c0_0 = arith.constant 0 : index
    %0 = vector.load %arg1[%c0, %c0_0] : memref<16x128xf32, #tpu.memory_space<vmem>>, vector<16x128xf32>
    %1 = tpu.iota {dimensions = array<i32: 0>} : vector<16x1xi32>
    %c0_1 = arith.constant 0 : index
    %2 = memref.load %arg2[%c0_1] : memref<11xf32, #tpu.memory_space<smem>>
    %c1_i32 = arith.constant 1 : i32
    %3 = tpu.dynamic_rotate %0 by %c1_i32 dim 0 : vector<16x128xf32>, i32 -> vector<16x128xf32>
    %c1_i32_2 = arith.constant 1 : i32
    %4 = vector.broadcast %c1_i32_2 : i32 to vector<16x1xi32>
    %5 = arith.cmpi sge, %1, %4 : vector<16x1xi32>
    %cst = arith.constant 0.000000e+00 : f32
    %6 = vector.broadcast %2 : f32 to vector<16x1xf32>
    %7 = vector.broadcast %cst : f32 to vector<16x1xf32>
    %8 = arith.select %5, %6, %7 : vector<16x1xi1>, vector<16x1xf32>
    %9 = vector.broadcast %8 : vector<16x1xf32> to vector<16x128xf32>
    %10 = arith.mulf %3, %9 : vector<16x128xf32>
    %c1 = arith.constant 1 : index
    %11 = memref.load %arg2[%c1] : memref<11xf32, #tpu.memory_space<smem>>
    %12 = vector.broadcast %11 : f32 to vector<16x128xf32>
    %13 = arith.mulf %0, %12 : vector<16x128xf32>
    %14 = arith.addf %10, %13 : vector<16x128xf32>
    %c2 = arith.constant 2 : index
    %15 = memref.load %arg2[%c2] : memref<11xf32, #tpu.memory_space<smem>>
    %c15_i32 = arith.constant 15 : i32
    %16 = tpu.dynamic_rotate %0 by %c15_i32 dim 0 : vector<16x128xf32>, i32 -> vector<16x128xf32>
    %c15_i32_3 = arith.constant 15 : i32
    %17 = vector.broadcast %c15_i32_3 : i32 to vector<16x1xi32>
    %18 = arith.cmpi slt, %1, %17 : vector<16x1xi32>
    %cst_4 = arith.constant 0.000000e+00 : f32
    %19 = vector.broadcast %15 : f32 to vector<16x1xf32>
    %20 = vector.broadcast %cst_4 : f32 to vector<16x1xf32>
    %21 = arith.select %18, %19, %20 : vector<16x1xi1>, vector<16x1xf32>
    %22 = vector.broadcast %21 : vector<16x1xf32> to vector<16x128xf32>
    %23 = arith.mulf %16, %22 : vector<16x128xf32>
    %24 = arith.addf %14, %23 : vector<16x128xf32>
    %c0_5 = arith.constant 0 : index
    %25 = memref.load %arg3[%c0_5] : memref<3xf32, #tpu.memory_space<smem>>
    %26 = vector.broadcast %25 : f32 to vector<16x128xf32>
    %27 = arith.addf %24, %26 : vector<16x128xf32>
    %cst_6 = arith.constant 0.000000e+00 : f32
    %28 = vector.broadcast %cst_6 : f32 to vector<16x128xf32>
    %29 = arith.cmpf ogt, %27, %28 : vector<16x128xf32>
    %c0_7 = arith.constant 0 : index
    %30 = memref.load %arg4[%c0_7] : memref<3xf32, #tpu.memory_space<smem>>
    %31 = vector.broadcast %30 : f32 to vector<16x128xf32>
    %32 = arith.mulf %31, %27 : vector<16x128xf32>
    %33 = arith.select %29, %27, %32 : vector<16x128xi1>, vector<16x128xf32>
    %c3 = arith.constant 3 : index
    %34 = memref.load %arg2[%c3] : memref<11xf32, #tpu.memory_space<smem>>
    %c2_i32 = arith.constant 2 : i32
    %35 = tpu.dynamic_rotate %33 by %c2_i32 dim 0 : vector<16x128xf32>, i32 -> vector<16x128xf32>
    %c2_i32_8 = arith.constant 2 : i32
    %36 = vector.broadcast %c2_i32_8 : i32 to vector<16x1xi32>
    %37 = arith.cmpi sge, %1, %36 : vector<16x1xi32>
    %cst_9 = arith.constant 0.000000e+00 : f32
    %38 = vector.broadcast %34 : f32 to vector<16x1xf32>
    %39 = vector.broadcast %cst_9 : f32 to vector<16x1xf32>
    %40 = arith.select %37, %38, %39 : vector<16x1xi1>, vector<16x1xf32>
    %41 = vector.broadcast %40 : vector<16x1xf32> to vector<16x128xf32>
    %42 = arith.mulf %35, %41 : vector<16x128xf32>
    %c4 = arith.constant 4 : index
    %43 = memref.load %arg2[%c4] : memref<11xf32, #tpu.memory_space<smem>>
    %c1_i32_10 = arith.constant 1 : i32
    %44 = tpu.dynamic_rotate %33 by %c1_i32_10 dim 0 : vector<16x128xf32>, i32 -> vector<16x128xf32>
    %c1_i32_11 = arith.constant 1 : i32
    %45 = vector.broadcast %c1_i32_11 : i32 to vector<16x1xi32>
    %46 = arith.cmpi sge, %1, %45 : vector<16x1xi32>
    %cst_12 = arith.constant 0.000000e+00 : f32
    %47 = vector.broadcast %43 : f32 to vector<16x1xf32>
    %48 = vector.broadcast %cst_12 : f32 to vector<16x1xf32>
    %49 = arith.select %46, %47, %48 : vector<16x1xi1>, vector<16x1xf32>
    %50 = vector.broadcast %49 : vector<16x1xf32> to vector<16x128xf32>
    %51 = arith.mulf %44, %50 : vector<16x128xf32>
    %52 = arith.addf %42, %51 : vector<16x128xf32>
    %c5 = arith.constant 5 : index
    %53 = memref.load %arg2[%c5] : memref<11xf32, #tpu.memory_space<smem>>
    %54 = vector.broadcast %53 : f32 to vector<16x128xf32>
    %55 = arith.mulf %33, %54 : vector<16x128xf32>
    %56 = arith.addf %52, %55 : vector<16x128xf32>
    %c6 = arith.constant 6 : index
    %57 = memref.load %arg2[%c6] : memref<11xf32, #tpu.memory_space<smem>>
    %c15_i32_13 = arith.constant 15 : i32
    %58 = tpu.dynamic_rotate %33 by %c15_i32_13 dim 0 : vector<16x128xf32>, i32 -> vector<16x128xf32>
    %c15_i32_14 = arith.constant 15 : i32
    %59 = vector.broadcast %c15_i32_14 : i32 to vector<16x1xi32>
    %60 = arith.cmpi slt, %1, %59 : vector<16x1xi32>
    %cst_15 = arith.constant 0.000000e+00 : f32
    %61 = vector.broadcast %57 : f32 to vector<16x1xf32>
    %62 = vector.broadcast %cst_15 : f32 to vector<16x1xf32>
    %63 = arith.select %60, %61, %62 : vector<16x1xi1>, vector<16x1xf32>
    %64 = vector.broadcast %63 : vector<16x1xf32> to vector<16x128xf32>
    %65 = arith.mulf %58, %64 : vector<16x128xf32>
    %66 = arith.addf %56, %65 : vector<16x128xf32>
    %c7 = arith.constant 7 : index
    %67 = memref.load %arg2[%c7] : memref<11xf32, #tpu.memory_space<smem>>
    %c14_i32 = arith.constant 14 : i32
    %68 = tpu.dynamic_rotate %33 by %c14_i32 dim 0 : vector<16x128xf32>, i32 -> vector<16x128xf32>
    %c14_i32_16 = arith.constant 14 : i32
    %69 = vector.broadcast %c14_i32_16 : i32 to vector<16x1xi32>
    %70 = arith.cmpi slt, %1, %69 : vector<16x1xi32>
    %cst_17 = arith.constant 0.000000e+00 : f32
    %71 = vector.broadcast %67 : f32 to vector<16x1xf32>
    %72 = vector.broadcast %cst_17 : f32 to vector<16x1xf32>
    %73 = arith.select %70, %71, %72 : vector<16x1xi1>, vector<16x1xf32>
    %74 = vector.broadcast %73 : vector<16x1xf32> to vector<16x128xf32>
    %75 = arith.mulf %68, %74 : vector<16x128xf32>
    %76 = arith.addf %66, %75 : vector<16x128xf32>
    %c1_18 = arith.constant 1 : index
    %77 = memref.load %arg3[%c1_18] : memref<3xf32, #tpu.memory_space<smem>>
    %78 = vector.broadcast %77 : f32 to vector<16x128xf32>
    %79 = arith.addf %76, %78 : vector<16x128xf32>
    %cst_19 = arith.constant 0.000000e+00 : f32
    %80 = vector.broadcast %cst_19 : f32 to vector<16x128xf32>
    %81 = arith.cmpf ogt, %79, %80 : vector<16x128xf32>
    %c1_20 = arith.constant 1 : index
    %82 = memref.load %arg4[%c1_20] : memref<3xf32, #tpu.memory_space<smem>>
    %83 = vector.broadcast %82 : f32 to vector<16x128xf32>
    %84 = arith.mulf %83, %79 : vector<16x128xf32>
    %85 = arith.select %81, %79, %84 : vector<16x128xi1>, vector<16x128xf32>
    %c8 = arith.constant 8 : index
    %86 = memref.load %arg2[%c8] : memref<11xf32, #tpu.memory_space<smem>>
    %c1_i32_21 = arith.constant 1 : i32
    %87 = tpu.dynamic_rotate %85 by %c1_i32_21 dim 0 : vector<16x128xf32>, i32 -> vector<16x128xf32>
    %c1_i32_22 = arith.constant 1 : i32
    %88 = vector.broadcast %c1_i32_22 : i32 to vector<16x1xi32>
    %89 = arith.cmpi sge, %1, %88 : vector<16x1xi32>
    %cst_23 = arith.constant 0.000000e+00 : f32
    %90 = vector.broadcast %86 : f32 to vector<16x1xf32>
    %91 = vector.broadcast %cst_23 : f32 to vector<16x1xf32>
    %92 = arith.select %89, %90, %91 : vector<16x1xi1>, vector<16x1xf32>
    %93 = vector.broadcast %92 : vector<16x1xf32> to vector<16x128xf32>
    %94 = arith.mulf %87, %93 : vector<16x128xf32>
    %c9 = arith.constant 9 : index
    %95 = memref.load %arg2[%c9] : memref<11xf32, #tpu.memory_space<smem>>
    %96 = vector.broadcast %95 : f32 to vector<16x128xf32>
    %97 = arith.mulf %85, %96 : vector<16x128xf32>
    %98 = arith.addf %94, %97 : vector<16x128xf32>
    %c10 = arith.constant 10 : index
    %99 = memref.load %arg2[%c10] : memref<11xf32, #tpu.memory_space<smem>>
    %c15_i32_24 = arith.constant 15 : i32
    %100 = tpu.dynamic_rotate %85 by %c15_i32_24 dim 0 : vector<16x128xf32>, i32 -> vector<16x128xf32>
    %c15_i32_25 = arith.constant 15 : i32
    %101 = vector.broadcast %c15_i32_25 : i32 to vector<16x1xi32>
    %102 = arith.cmpi slt, %1, %101 : vector<16x1xi32>
    %cst_26 = arith.constant 0.000000e+00 : f32
    %103 = vector.broadcast %99 : f32 to vector<16x1xf32>
    %104 = vector.broadcast %cst_26 : f32 to vector<16x1xf32>
    %105 = arith.select %102, %103, %104 : vector<16x1xi1>, vector<16x1xf32>
    %106 = vector.broadcast %105 : vector<16x1xf32> to vector<16x128xf32>
    %107 = arith.mulf %100, %106 : vector<16x128xf32>
    %108 = arith.addf %98, %107 : vector<16x128xf32>
    %c2_27 = arith.constant 2 : index
    %109 = memref.load %arg3[%c2_27] : memref<3xf32, #tpu.memory_space<smem>>
    %110 = vector.broadcast %109 : f32 to vector<16x128xf32>
    %111 = arith.addf %108, %110 : vector<16x128xf32>
    %cst_28 = arith.constant 0.000000e+00 : f32
    %112 = vector.broadcast %cst_28 : f32 to vector<16x128xf32>
    %113 = arith.cmpf ogt, %111, %112 : vector<16x128xf32>
    %c2_29 = arith.constant 2 : index
    %114 = memref.load %arg4[%c2_29] : memref<3xf32, #tpu.memory_space<smem>>
    %115 = vector.broadcast %114 : f32 to vector<16x128xf32>
    %116 = arith.mulf %115, %111 : vector<16x128xf32>
    %117 = arith.select %113, %111, %116 : vector<16x128xi1>, vector<16x128xf32>
    %c0_30 = arith.constant 0 : index
    %c0_31 = arith.constant 0 : index
    %118 = vector.load %arg5[%c0_30, %c0_31] : memref<16x128xf32, #tpu.memory_space<vmem>>, vector<16x128xf32>
    tpu.vector_store %arg5[%c0_30, %c0_31], %117 {strides = array<i32>} : memref<16x128xf32, #tpu.memory_space<vmem>>, vector<16x128xf32>,
    return
  }
  func.func @transform_0(%arg0: i32) -> (i32, i32) {
    %c0_i32 = arith.constant 0 : i32
    %c0_i32_0 = arith.constant 0 : i32
    return %c0_i32, %arg0 : i32, i32
  }
  func.func @transform_1(%arg0: i32) -> i32 {
    %c0_i32 = arith.constant 0 : i32
    %c0_i32_0 = arith.constant 0 : i32
    return %c0_i32 : i32
  }
  func.func @transform_2(%arg0: i32) -> i32 {
    %c0_i32 = arith.constant 0 : i32
    %c0_i32_0 = arith.constant 0 : i32
    return %c0_i32 : i32
  }
  func.func @transform_3(%arg0: i32) -> i32 {
    %c0_i32 = arith.constant 0 : i32
    %c0_i32_0 = arith.constant 0 : i32
    return %c0_i32 : i32
  }
  func.func @transform_4(%arg0: i32) -> (i32, i32) {
    %c0_i32 = arith.constant 0 : i32
    %c0_i32_0 = arith.constant 0 : i32
    return %c0_i32, %arg0 : i32, i32
  }
}

</mosaic_0001>

<bundles_post_ra>
// kernel: tpu_custom_call.1
= control target key start
LH: loop header
LB: loop body
LE: loop exit
PB: predicated region body
PF: predicated region fallthrough
CT: control target
= control target key end

     0   :  { %9 = vsyncpa [#allocation3], 0  ;;  %s514_s0 = inlined_call_operand.hbm [shape: f32[16,128], index: 0, kind: input, shape index: {}]   ;;  %s515_s1 = inlined_call_operand.vmem [shape: f32[11], index: 1, kind: input, shape index: {}]   ;;  %s516_s2 = inlined_call_operand.vmem [shape: f32[3], index: 2, kind: input, shape index: {}]   ;;  %s517_s3 = inlined_call_operand.vmem [shape: f32[3], index: 3, kind: input, shape index: {}]   ;;  %s518_s4 = inlined_call_operand.hbm [shape: f32[16,128], index: 4, kind: output, shape index: {}]  }
   0x1   :  { %10 = vsyncpa [#allocation5], 0 }
   0x2   :  { %11 = vsyncpa [#allocation8], 0  ;;  %s41_s17 = sshll.u32 %s516_s2, 4  ;;  %s42_s17 = int_to_ptr.vmem [resolvable:$true] %s41_s17 }
   0x3   :  { %12 = vsyncpa [#allocation4], 0  ;;  %s271_s18 = scalar_lea.vmem %s42_s17, 16  ;;  %p276_p1 = scmp.lt.s32.totalorder %s42_s17, %s42_s17 }
   0x4   :  { %p272_p0 = scmp.ne.s32.totalorder %s42_s17, %s271_s18  ;;  %p277_p2 = scmp.lt.s32.totalorder %s271_s18, %s271_s18 }
   0x6   :  { %p278_p3 = por %p277_p2, %p276_p1 }
   0x8   :  { %p279_p4 = pnand %p278_p3, %p272_p0 }
   0xa   :  { %282 = shalt.err (!%p279_p4)
}
   0xb   :  { %s359_s19 = smov [#allocation7]   ;;  %s360_s20 = smov [#allocation2]  }
   0xc   :  { %44 = dma.vmem_to_smem %s42_s17, 16, %s359_s19, [#allocation8]  }
   0xd   :  { %s18_s21 = sshll.u32 %s360_s20, 4  ;;  %s283_s24 = scalar_lea.hbm %s514_s0, 256  ;;  %s19_s21 = int_to_ptr.vmem [resolvable:$true] %s18_s21 }
   0xe   :  { %p284_p5 = scmp.ne.s32.totalorder %s514_s0, %s283_s24  ;;  %p287_p6 = scmp.lt.u32.totalorder %s283_s24, %s514_s0 }
  0x10   :  { %p289_p7 = pnand %p287_p6, %p284_p5 }
  0x12   :  { %292 = shalt.err (!%p289_p7)
}
  0x13   :  { %s293_s28 = scalar_lea.vmem %s19_s21, 256  ;;  %p298_p9 = scmp.lt.s32.totalorder %s19_s21, %s19_s21 }
  0x14   :  { %p294_p8 = scmp.ne.s32.totalorder %s19_s21, %s293_s28  ;;  %p299_p10 = scmp.lt.s32.totalorder %s293_s28, %s293_s28 }
  0x16   :  { %p300_p11 = por %p299_p10, %p298_p9 }
  0x18   :  { %p301_p12 = pnand %p300_p11, %p294_p8 }
  0x1a   :  { %304 = shalt.err (!%p301_p12)
}
  0x1b   :  { %s361_s29 = smov 128   ;;  %s362_s30 = smov 8  }
  0x1c   :  { %24 = dma.hbm_to_vmem [thread:$0]  %s514_s0, 256, %s19_s21, [#allocation3], %s361_s29, %s361_s29, %s362_s30  }
  0x1d   :  { %s31_s9 = sshll.u32 %s515_s1, 4  ;;  %s51_s12 = sshll.u32 %s517_s3, 4  ;;  %s32_s9 = int_to_ptr.vmem [resolvable:$true] %s31_s9  ;;  %s52_s12 = int_to_ptr.vmem [resolvable:$true] %s51_s12 }
  0x1e   :  { %s305_s13 = scalar_lea.vmem %s32_s9, 16  ;;  %p310_p0 = scmp.lt.s32.totalorder %s32_s9, %s32_s9 }
  0x1f   :  { %p306_p13 = scmp.ne.s32.totalorder %s32_s9, %s305_s13  ;;  %p311_p1 = scmp.lt.s32.totalorder %s305_s13, %s305_s13 }
  0x21   :  { %p312_p2 = por %p311_p1, %p310_p0 }
  0x23   :  { %p313_p3 = pnand %p312_p2, %p306_p13 }
  0x25   :  { %316 = shalt.err (!%p313_p3)
}
  0x26   :  { %s363_s14 = smov [#allocation6]   ;;  %s317_s0 = scalar_lea.vmem %s52_s12, 16 }
  0x27   :  { %34 = dma.vmem_to_smem %s32_s9, 16, %s363_s14, [#allocation5]  }
  0x28   :  { %p318_p4 = scmp.ne.s32.totalorder %s52_s12, %s317_s0  ;;  %p322_p5 = scmp.lt.s32.totalorder %s52_s12, %s52_s12 }
  0x29   :  { %p323_p6 = scmp.lt.s32.totalorder %s317_s0, %s317_s0 }
  0x2b   :  { %p324_p7 = por %p323_p6, %p322_p5 }
  0x2d   :  { %p325_p8 = pnand %p324_p7, %p318_p4 }
  0x2f   :  { %328 = shalt.err (!%p325_p8)
}
  0x30   :  { %s364_s1 = smov [#allocation9]  }
  0x31   :  { %54 = dma.vmem_to_smem %s52_s12, 16, %s364_s1, [#allocation8]  }
  0x32   :  { %351 = dma.done.wait [#allocation3], 256  }
  0x33   :  { %352 = vsyncadd [#allocation3], 4294967040 }
  0x34   :  { %353 = dma.done.wait [#allocation5], 16  }
  0x35   :  { %354 = vsyncadd [#allocation5], 4294967280 }
  0x36   :  { %355 = dma.done.wait [#allocation8], 32  }
  0x37   :  { %356 = vsyncadd [#allocation8], 4294967264 }
  0x38   :  { %67 = sfence }
  0x39   :  { %v68_v0 = vld [vmem:[#allocation2] sm:$0xff]  ;;  %v69_v1 = vld [vmem:[#allocation2 + $0x8] sm:$0xff]  ;;  %v70_v2 = vlaneseq  ;;  %s73_s3 = sld [smem:[#allocation6]]  ;;  %s250_s15 = sld [smem:[#allocation6 + $0x1]] }
  0x3a   :  { %v74_v3 = vrot.slane %v68_v0, 7  ;;  %v75_v4 = vrot.slane %v69_v1, 7  ;;  %s251_s16 = sld [smem:[#allocation6 + $0x2]]  ;;  %v93_v5 = vrot.slane %v68_v0, 1  ;;  %v94_v6 = vrot.slane %v69_v1, 1  ;;  %s417_s17 = sld [smem:[#allocation7]] }
  0x3b   :  { %v415_v7 = vshrl.u32 %v70_v2, 7  ;;  %s431_s18 = sld [smem:[#allocation9]]  ;;  %s433_s19 = sld [smem:[#allocation6 + $0x3]] }
  0x3c   :  { %s438_s20 = sld [smem:[#allocation6 + $0x4]]  ;;  %s440_s21 = sld [smem:[#allocation6 + $0x6]] }
  0x3d   :  { %v420_v8 = vadd.s32 8, %v415_v7  ;;  %vm76_vm0 = vcmp.lt.s32.totalorder %v415_v7, 1  ;;  %vm79_vm1 = vcmp.ge.s32.totalorder %v415_v7, 1  ;;  %vm95_vm2 = vcmp.lt.s32.totalorder %v415_v7, 7  ;;  %s444_s22 = sld [smem:[#allocation6 + $0x7]]  ;;  %s448_s23 = sld [smem:[#allocation6 + $0x5]] }
  0x3e   :  { %v77_v9 = vsel %vm76_vm0, %v74_v3, %v75_v4  ;;  %v78_v10 = vsel %vm76_vm0, %v75_v4, %v74_v3  ;;  %v96_v11 = vsel %vm95_vm2, %v93_v5, %v94_v6  ;;  %v97_v14 = vsel %vm95_vm2, %v94_v6, %v93_v5  ;;  %s257_s24 = sld [smem:[#allocation7 + $0x1]]  ;;  %s481_s2 = sld [smem:[#allocation6 + $0x8]] }
  0x3f   :  { %v81_v12 = vstv %s73_s3  ;;  %v87_v13 = vstv %s250_s15  ;;  %vm99_vm3 = vcmp.lt.s32.totalorder %v420_v8, 15  ;;  %vm125_vm4 = vcmp.ge.s32.totalorder %v415_v7, 2  ;;  %s258_s25 = sld [smem:[#allocation9 + $0x1]]  ;;  %s483_s27 = sld [smem:[#allocation6 + $0xa]] }
  0x40   :  { %v82_v15 = vsel %vm79_vm1, %v81_v12, 0.0  ;;  %v85_v16 = vmul.f32 %v81_v12, %v77_v9  ;;  %v88_v17 = vmul.f32 %v87_v13, %v68_v0  ;;  %v89_v18 = vmul.f32 %v87_v13, %v69_v1  ;;  %s260_s26 = sld [smem:[#allocation6 + $0x9]]  ;;  %s262_s28 = sld [smem:[#allocation7 + $0x2]] }
  0x41   :  { %v84_v19 = vmul.f32 %v82_v15, %v78_v10  ;;  %v100_v20 = vstv %s251_s16  ;;  %v108_v26 = vstv %s417_s17  ;;  %v114_v29 = vstv %s431_s18  ;;  %s263_s5 = sld [smem:[#allocation9 + $0x2]]  ;;  %s365_s6 = smov [#allocation10]  }
  0x42   :  { %v91_v21 = vadd.f32 %v89_v18, %v85_v16  ;;  %v102_v22 = vsel %vm99_vm3, %v100_v20, 0.0  ;;  %v103_v23 = vmul.f32 %v100_v20, %v96_v11  ;;  %v127_v30 = vstv %s433_s19  ;;  %s236_s7 = sshll.u32 %s365_s6, 4  ;;  %s237_s7 = int_to_ptr.vmem [resolvable:$true] %s236_s7 }
  0x43   :  { %v90_v24 = vadd.f32 %v88_v17, %v84_v19  ;;  %v104_v25 = vmul.f32 %v102_v22, %v97_v14  ;;  %v137_v33 = vstv %s438_s20  ;;  %v155_v34 = vstv %s440_s21  ;;  %s329_s8 = scalar_lea.vmem %s237_s7, 256  ;;  %p334_p10 = scmp.lt.s32.totalorder %s237_s7, %s237_s7 }
  0x44   :  { %vm122_vm5 = vcmp.lt.s32.totalorder %v415_v7, 2  ;;  %vm169_vm6 = vcmp.lt.s32.totalorder %v420_v8, 14  ;;  %v170_v35 = vstv %s444_s22  ;;  %v128_v38 = vsel %vm125_vm4, %v127_v30, 0.0  ;;  %p330_p9 = scmp.ne.s32.totalorder %s237_s7, %s329_s8  ;;  %p335_p11 = scmp.lt.s32.totalorder %s329_s8, %s329_s8 }
  0x45   :  { %v105_v27 = vadd.f32 %v103_v23, %v90_v24  ;;  %v106_v28 = vadd.f32 %v104_v25, %v91_v21  ;;  %v138_v39 = vsel %vm79_vm1, %v137_v33, 0.0  ;;  %v145_v40 = vstv %s448_s23 }
  0x46   :  { %v157_v41 = vsel %vm99_vm3, %v155_v34, 0.0  ;;  %vm165_vm9 = vcmp.lt.s32.totalorder %v415_v7, 6  ;;  %v172_v44 = vsel %vm169_vm6, %v170_v35, 0.0  ;;  %v178_v15 = vstv %s257_s24  ;;  %p336_p12 = por %p335_p11, %p334_p10 }
  0x47   :  { %v109_v31 = vadd.f32 %v108_v26, %v105_v27  ;;  %v110_v32 = vadd.f32 %v108_v26, %v106_v28  ;;  %v184_v18 = vstv %s258_s25  ;;  %v194_v21 = vstv %s481_s2 }
  0x48   :  { %v200_v24 = vstv %s260_s26  ;;  %v210_v25 = vstv %s483_s27  ;;  %v218_v8 = vstv %s262_s28  ;;  %p337_p13 = pnand %p336_p12, %p330_p9 }
  0x49   :  { %vm111_vm7 = vcmp.gt.f32.partialorder %v109_v31, 0.0  ;;  %vm112_vm8 = vcmp.gt.f32.partialorder %v110_v32, 0.0  ;;  %v115_v36 = vmul.f32 %v114_v29, %v109_v31  ;;  %v116_v37 = vmul.f32 %v114_v29, %v110_v32 }
  0x4b   :  { %v117_v42 = vsel %vm111_vm7, %v109_v31, %v115_v36  ;;  %v118_v43 = vsel %vm112_vm8, %v110_v32, %v116_v37 }
  0x4c   :  { %v120_v45 = vrot.slane %v117_v42, 6  ;;  %v121_v46 = vrot.slane %v118_v43, 6  ;;  %v133_v47 = vrot.slane %v117_v42, 7  ;;  %v134_v48 = vrot.slane %v118_v43, 7 }
  0x4d   :  { %v146_v49 = vmul.f32 %v145_v40, %v117_v42  ;;  %v147_v50 = vmul.f32 %v145_v40, %v118_v43  ;;  %v151_v51 = vrot.slane %v117_v42, 1  ;;  %v152_v52 = vrot.slane %v118_v43, 1 }
  0x4e   :  { %v123_v53 = vsel %vm122_vm5, %v120_v45, %v121_v46  ;;  %v124_v54 = vsel %vm122_vm5, %v121_v46, %v120_v45  ;;  %v135_v55 = vsel %vm76_vm0, %v133_v47, %v134_v48  ;;  %v136_v56 = vsel %vm76_vm0, %v134_v48, %v133_v47 }
  0x4f   :  { %v130_v57 = vmul.f32 %v128_v38, %v124_v54  ;;  %v131_v58 = vmul.f32 %v127_v30, %v123_v53  ;;  %v140_v59 = vmul.f32 %v138_v39, %v136_v56  ;;  %v141_v60 = vmul.f32 %v137_v33, %v135_v55 }
  0x50   :  { %v153_v61 = vsel %vm95_vm2, %v151_v51, %v152_v52  ;;  %v154_v62 = vsel %vm95_vm2, %v152_v52, %v151_v51  ;;  %v163_v63 = vrot.slane %v117_v42, 2  ;;  %v164_v0 = vrot.slane %v118_v43, 2 }
  0x51   :  { %v142_v1 = vadd.f32 %v140_v59, %v130_v57  ;;  %v143_v2 = vadd.f32 %v141_v60, %v131_v58  ;;  %v158_v3 = vmul.f32 %v155_v34, %v153_v61  ;;  %v159_v4 = vmul.f32 %v157_v41, %v154_v62 }
  0x52   :  { %v166_v5 = vsel %vm165_vm9, %v163_v63, %v164_v0  ;;  %v167_v6 = vsel %vm165_vm9, %v164_v0, %v163_v63  ;;  %v195_v30 = vsel %vm79_vm1, %v194_v21, 0.0  ;;  %v224_v48 = vstv %s263_s5 }
  0x53   :  { %v148_v9 = vadd.f32 %v146_v49, %v142_v1  ;;  %v149_v10 = vadd.f32 %v147_v50, %v143_v2  ;;  %v173_v11 = vmul.f32 %v170_v35, %v166_v5  ;;  %v174_v12 = vmul.f32 %v172_v44, %v167_v6 }
  0x54   :  { %v212_v35 = vsel %vm99_vm3, %v210_v25, 0.0 }
  0x55   :  { %v160_v13 = vadd.f32 %v158_v3, %v148_v9  ;;  %v161_v14 = vadd.f32 %v159_v4, %v149_v10 }
  0x57   :  { %v175_v16 = vadd.f32 %v173_v11, %v160_v13  ;;  %v176_v17 = vadd.f32 %v174_v12, %v161_v14 }
  0x59   :  { %v179_v19 = vadd.f32 %v178_v15, %v175_v16  ;;  %v180_v20 = vadd.f32 %v178_v15, %v176_v17 }
  0x5b   :  { %vm181_vm10 = vcmp.gt.f32.partialorder %v179_v19, 0.0  ;;  %vm182_vm11 = vcmp.gt.f32.partialorder %v180_v20, 0.0  ;;  %v185_v22 = vmul.f32 %v184_v18, %v179_v19  ;;  %v186_v23 = vmul.f32 %v184_v18, %v180_v20 }
  0x5d   :  { %v187_v26 = vsel %vm181_vm10, %v179_v19, %v185_v22  ;;  %v188_v27 = vsel %vm182_vm11, %v180_v20, %v186_v23 }
  0x5e   :  { %v190_v28 = vrot.slane %v187_v26, 7  ;;  %v191_v29 = vrot.slane %v188_v27, 7  ;;  %v206_v31 = vrot.slane %v187_v26, 1  ;;  %v201_v32 = vmul.f32 %v200_v24, %v187_v26 }
  0x5f   :  { %v207_v33 = vrot.slane %v188_v27, 1  ;;  %v202_v34 = vmul.f32 %v200_v24, %v188_v27 }
  0x60   :  { %v193_v36 = vsel %vm76_vm0, %v191_v29, %v190_v28  ;;  %v192_v37 = vsel %vm76_vm0, %v190_v28, %v191_v29 }
  0x61   :  { %v197_v38 = vmul.f32 %v195_v30, %v193_v36  ;;  %v208_v39 = vsel %vm95_vm2, %v206_v31, %v207_v33  ;;  %v198_v40 = vmul.f32 %v194_v21, %v192_v37  ;;  %v209_v41 = vsel %vm95_vm2, %v207_v33, %v206_v31 }
  0x62   :  { %v213_v42 = vmul.f32 %v210_v25, %v208_v39  ;;  %v214_v43 = vmul.f32 %v212_v35, %v209_v41 }
  0x63   :  { %v203_v44 = vadd.f32 %v201_v32, %v197_v38  ;;  %v204_v45 = vadd.f32 %v202_v34, %v198_v40 }
  0x65   :  { %v215_v46 = vadd.f32 %v213_v42, %v203_v44  ;;  %v216_v47 = vadd.f32 %v214_v43, %v204_v45 }
  0x67   :  { %v219_v49 = vadd.f32 %v218_v8, %v215_v46  ;;  %v220_v50 = vadd.f32 %v218_v8, %v216_v47 }
  0x69   :  { %vm221_vm12 = vcmp.gt.f32.partialorder %v219_v49, 0.0  ;;  %v225_v51 = vmul.f32 %v224_v48, %v219_v49  ;;  %vm222_vm13 = vcmp.gt.f32.partialorder %v220_v50, 0.0  ;;  %v226_v52 = vmul.f32 %v224_v48, %v220_v50 }
  0x6b   :  { %v227_v53 = vsel %vm221_vm12, %v219_v49, %v225_v51  ;;  %v228_v7 = vsel %vm222_vm13, %v220_v50, %v226_v52 }
  0x6c   :  { %229 = vst [vmem:[#allocation10] sm:$0xff] %v227_v53  ;;  %230 = vst [vmem:[#allocation10 + $0x8] sm:$0xff] %v228_v7 }
  0x6d   :  { %340 = shalt.err (!%p337_p13)
}
  0x6e   :  { %s341_s11 = scalar_lea.hbm %s518_s4, 256 }
  0x6f   :  { %p342_p0 = scmp.ne.s32.totalorder %s518_s4, %s341_s11  ;;  %p345_p1 = scmp.lt.u32.totalorder %s341_s11, %s518_s4 }
  0x71   :  { %p347_p2 = pnand %p345_p1, %p342_p0 }
  0x73   :  { %350 = shalt.err (!%p347_p2)
}
  0x74   :  { %242 = dma.vmem_to_hbm [thread:$0]  %s237_s7, 256, %s518_s4, [#allocation4], %s361_s29, %s361_s29, %s362_s30  }
  0x75   :  { %357 = dma.done.wait [#allocation4], 256  }
  0x76   :  { %358 = vsyncadd [#allocation4], 4294967040 }
  0x77   :  { %246 = vsyncpa [#allocation3], 1 }
  0x78   :  { %247 = vsyncpa [#allocation4], 1 }
  0x79   :  { %248 = vsyncpa [#allocation5], 1 }
  0x7a   :  { %249 = vsyncpa [#allocation8], 1 }

</bundles_post_ra>
